<compile_context>
chip_gen: v5e
topology: v5e:2x2
jax: 0.10.0
libtpu: 0.0.40
codegen_flags: <defaults>
</compile_context>

<pallas_src>
import functools
import math

import jax
import jax.numpy as jnp
from jax import lax
from jax.experimental import pallas as pl
from jax.experimental.pallas import tpu as pltpu

EPS = 1e-5
LANE = 128


def _round_up(x, m):
    return (x + m - 1) // m * m


def _stats2(y):
    # (L, C) -> (2, C): row 0 = sum, row 1 = sum of squares (single pass)
    return jnp.concatenate([jnp.sum(y, axis=0, keepdims=True),
                            jnp.sum(y * y, axis=0, keepdims=True)], axis=0)


def _halo_conv3(x, w_ref, pad_ref):
    """k=3 / pad=1 / stride=1 conv as 3 MXU matmuls on a zero-padded VMEM halo buffer.

    pad_ref has shape (L+2, C).  Boundary rows are re-zeroed on every call so the
    kernel is correct even when the batch grid axis is split across megacores.
    """
    l, c = x.shape
    pad_ref[0:1, :] = jnp.zeros((1, c), jnp.float32)
    pad_ref[l + 1:l + 2, :] = jnp.zeros((1, c), jnp.float32)
    pad_ref[1:l + 1, :] = x
    z = jnp.dot(pad_ref[0:l, :], w_ref[0], preferred_element_type=jnp.float32)
    z = z + jnp.dot(pad_ref[1:l + 1, :], w_ref[1], preferred_element_type=jnp.float32)
    z = z + jnp.dot(pad_ref[2:l + 2, :], w_ref[2], preferred_element_type=jnp.float32)
    return z


# ----------------------------- Pallas kernels ------------------------------ #
def _conv1_kernel(x_ref, w1_ref, y1_ref, st1_ref, xpad):
    """conv1 + BN1 partial stats (identity-shortcut case)."""
    y1 = _halo_conv3(x_ref[0], w1_ref, xpad)
    y1_ref[0] = y1
    st1_ref[0] = _stats2(y1)


def _conv1_sc_kernel(x_ref, w1_ref, ws_ref, y1_ref, sc_ref, st1_ref, stsc_ref, xpad):
    """conv1 + 1x1 shortcut conv + partial stats for both BNs."""
    x = x_ref[0]                                                  # (L, Cin)
    y1 = _halo_conv3(x, w1_ref, xpad)
    y1_ref[0] = y1
    st1_ref[0] = _stats2(y1)
    sc = jnp.dot(x, ws_ref[...], preferred_element_type=jnp.float32)   # 1x1 conv, no pad
    sc_ref[0] = sc
    stsc_ref[0] = _stats2(sc)


def _conv2_kernel(y1_ref, s1_ref, h1_ref, w2_ref, z_ref, st2_ref, apad):
    """bn1-normalize + relu + conv2 + BN2 partial stats."""
    a = jnp.maximum(y1_ref[0] * s1_ref[...] + h1_ref[...], 0.0)   # bn1 + relu
    z = _halo_conv3(a, w2_ref, apad)
    z_ref[0] = z
    st2_ref[0] = _stats2(z)


def _final_id_kernel(z_ref, xid_ref, s2_ref, h2_ref, out_ref):
    """bn2-normalize + identity residual + relu."""
    z = z_ref[0] * s2_ref[...] + h2_ref[...]
    out_ref[0] = jnp.maximum(z + xid_ref[0], 0.0)


def _final_sc_kernel(z_ref, sc_ref, s2_ref, h2_ref, ss_ref, hs_ref, out_ref):
    """bn2-normalize + shortcut-BN-normalize + residual + relu."""
    z = z_ref[0] * s2_ref[...] + h2_ref[...]
    s = sc_ref[0] * ss_ref[...] + hs_ref[...]
    out_ref[0] = jnp.maximum(z + s, 0.0)


# ------------------------------ small helpers ------------------------------ #
def _cparams(block_shapes):
    """Batch grid axis is parallel (megacore); explicit VMEM budget with headroom."""
    est = 2 * sum(4 * math.prod(s) for s in block_shapes)         # f32, double-buffered
    lim = int(min(48 * 2 ** 20, max(32 * 2 ** 20, est + (4 << 20))))
    return pltpu.CompilerParams(dimension_semantics=("parallel",),
                                vmem_limit_bytes=lim)


def _bn_affine(st, g, b, count):
    """Fold per-sample (sum, sumsq) partials into per-channel BN scale/shift (training mode)."""
    tot = jnp.sum(st, axis=0)                                     # (2, Cp)
    mu = tot[0] / count
    var = tot[1] / count - mu * mu                                # biased variance
    scale = g * lax.rsqrt(var + EPS)
    shift = b - mu * scale
    return scale.reshape(1, -1), shift.reshape(1, -1)


# --------------------------------- wrapper --------------------------------- #
@functools.partial(jax.jit, static_argnames=("has_shortcut",))
def basic_block1d(x, params, has_shortcut):
    """x: (N, Cin, L) float32 -> (N, Cout, L) float32 (PyTorch NCL layout)."""
    N, Cin, L = x.shape
    Cout = params['w1'].shape[0]
    Cp = _round_up(Cout, LANE)                                    # lane-dense channel width
    count = float(N * L)

    # layout prep: channels-last activations; tap-major, output-channel-padded weights
    x_cl = jnp.transpose(x, (0, 2, 1)).astype(jnp.float32)        # (N, L, Cin)

    w1 = jnp.pad(jnp.transpose(params['w1'], (2, 1, 0)),          # (3, Cin, Cp)
                 ((0, 0), (0, 0), (0, Cp - Cout)))
    w2 = jnp.pad(jnp.transpose(params['w2'], (2, 1, 0)),          # (3, Cp, Cp)
                 ((0, 0), (0, Cp - Cout), (0, Cp - Cout)))

    pad_c = lambda v: jnp.pad(v, (0, Cp - Cout))
    g1, b1 = pad_c(params['g1']), pad_c(params['b1'])
    g2, b2 = pad_c(params['g2']), pad_c(params['b2'])

    def full(shp):
        n = len(shp)
        return pl.BlockSpec(shp, lambda b: (0,) * n)

    x_spec = pl.BlockSpec((1, L, Cin), lambda b: (b, 0, 0))
    row_spec = pl.BlockSpec((1, L, Cp), lambda b: (b, 0, 0))
    st_spec = pl.BlockSpec((1, 2, Cp), lambda b: (b, 0, 0))
    vec_spec = pl.BlockSpec((1, Cp), lambda b: (0, 0))

    row_struct = jax.ShapeDtypeStruct((N, L, Cp), jnp.float32)
    st_struct = jax.ShapeDtypeStruct((N, 2, Cp), jnp.float32)

    # --- stage A: conv1 (+ shortcut conv) + partial stats ---
    if has_shortcut:
        ws = jnp.pad(jnp.transpose(params['ws'], (2, 1, 0))[0],
                     ((0, 0), (0, Cp - Cout)))                    # (Cin, Cp)
        gs, bs = pad_c(params['gs']), pad_c(params['bs'])
        y1, sc, st1, stsc = pl.pallas_call(
            _conv1_sc_kernel,
            grid=(N,),
            in_specs=[x_spec, full((3, Cin, Cp)), full((Cin, Cp))],
            out_specs=[row_spec, row_spec, st_spec, st_spec],
            out_shape=[row_struct, row_struct, st_struct, st_struct],
            scratch_shapes=[pltpu.VMEM((L + 2, Cin), jnp.float32)],
            compiler_params=_cparams([(L, Cin), (3, Cin, Cp), (Cin, Cp),
                                      (L, Cp), (L, Cp), (2, Cp), (2, Cp), (L + 2, Cin)]),
        )(x_cl, w1, ws)
    else:
        y1, st1 = pl.pallas_call(
            _conv1_kernel,
            grid=(N,),
            in_specs=[x_spec, full((3, Cin, Cp))],
            out_specs=[row_spec, st_spec],
            out_shape=[row_struct, st_struct],
            scratch_shapes=[pltpu.VMEM((L + 2, Cin), jnp.float32)],
            compiler_params=_cparams([(L, Cin), (3, Cin, Cp),
                                      (L, Cp), (2, Cp), (L + 2, Cin)]),
        )(x_cl, w1)

    scale1, shift1 = _bn_affine(st1, g1, b1, count)

    # --- stage B: bn1 + relu + conv2 + partial stats ---
    z, st2 = pl.pallas_call(
        _conv2_kernel,
        grid=(N,),
        in_specs=[row_spec, vec_spec, vec_spec, full((3, Cp, Cp))],
        out_specs=[row_spec, st_spec],
        out_shape=[row_struct, st_struct],
        scratch_shapes=[pltpu.VMEM((L + 2, Cp), jnp.float32)],
        compiler_params=_cparams([(L, Cp), (1, Cp), (1, Cp), (3, Cp, Cp),
                                  (L, Cp), (2, Cp), (L + 2, Cp)]),
    )(y1, scale1, shift1, w2)

    scale2, shift2 = _bn_affine(st2, g2, b2, count)

    # --- stage C: bn2 (+ shortcut bn) + residual add + relu ---
    if has_shortcut:
        scale_s, shift_s = _bn_affine(stsc, gs, bs, count)
        out_p = pl.pallas_call(
            _final_sc_kernel,
            grid=(N,),
            in_specs=[row_spec, row_spec, vec_spec, vec_spec, vec_spec, vec_spec],
            out_specs=row_spec,
            out_shape=row_struct,
            compiler_params=_cparams([(L, Cp)] * 3 + [(1, Cp)] * 4),
        )(z, sc, scale2, shift2, scale_s, shift_s)
    else:
        x_id = jnp.pad(x_cl, ((0, 0), (0, 0), (0, Cp - Cin)))     # identity shortcut, lane-padded
        out_p = pl.pallas_call(
            _final_id_kernel,
            grid=(N,),
            in_specs=[row_spec, row_spec, vec_spec, vec_spec],
            out_specs=row_spec,
            out_shape=row_struct,
            compiler_params=_cparams([(L, Cp)] * 3 + [(1, Cp)] * 2),
        )(z, x_id, scale2, shift2)

    return jnp.transpose(out_p[:, :, :Cout], (0, 2, 1))           # back to (N, Cout, L)


# --------------------------- pure-JAX reference ---------------------------- #
def reference_block(x, params, has_shortcut):
    def conv1d(x, w, pad):
        return lax.conv_general_dilated(x, w, window_strides=(1,),
                                        padding=[(pad, pad)],
                                        dimension_numbers=('NCH', 'OIH', 'NCH'))

    def bn(x, g, b):
        mu = x.mean(axis=(0, 2), keepdims=True)
        var = ((x - mu) ** 2).mean(axis=(0, 2), keepdims=True)
        return (x - mu) / jnp.sqrt(var + EPS) * g.reshape(1, -1, 1) + b.reshape(1, -1, 1)

    out = jax.nn.relu(bn(conv1d(x, params['w1'], 1), params['g1'], params['b1']))
    out = bn(conv1d(out, params['w2'], 1), params['g2'], params['b2'])
    if has_shortcut:
        sc = bn(conv1d(x, params['ws'], 0), params['gs'], params['bs'])
    else:
        sc = x
    return jax.nn.relu(out + sc)


# ------------------------------ param init --------------------------------- #
def init_params(key, cin, cout, has_shortcut):
    ks = jax.random.split(key, 9)
    p = {
        'w1': 0.3 * jax.random.normal(ks[0], (cout, cin, 3), jnp.float32),
        'w2': 0.3 * jax.random.normal(ks[1], (cout, cout, 3), jnp.float32),
        'g1': 1.0 + 0.1 * jax.random.normal(ks[2], (cout,), jnp.float32),
        'b1': 0.1 * jax.random.normal(ks[3], (cout,), jnp.float32),
        'g2': 1.0 + 0.1 * jax.random.normal(ks[4], (cout,), jnp.float32),
        'b2': 0.1 * jax.random.normal(ks[5], (cout,), jnp.float32),
    }
    if has_shortcut:
        p['ws'] = 0.3 * jax.random.normal(ks[6], (cout, cin, 1), jnp.float32)
        p['gs'] = 1.0 + 0.1 * jax.random.normal(ks[7], (cout,), jnp.float32)
        p['bs'] = 0.1 * jax.random.normal(ks[8], (cout,), jnp.float32)
    return p


if __name__ == "__main__":
    key = jax.random.PRNGKey(0)
    N, L = 2, 16
    kx1, kp1, kx2, kp2 = jax.random.split(key, 4)

    # case 1: channel change -> 1x1-conv + BN shortcut branch
    cin, cout = 4, 8
    x1 = jax.random.normal(kx1, (N, cin, L), jnp.float32)
    p1 = init_params(kp1, cin, cout, has_shortcut=True)
    out1 = jax.block_until_ready(basic_block1d(x1, p1, has_shortcut=True))
    ref1 = reference_block(x1, p1, has_shortcut=True)
    assert out1.shape == (N, cout, L)
    assert jnp.allclose(out1, ref1, rtol=2e-3, atol=2e-3), "shortcut-branch mismatch"

    # case 2: identity shortcut (in_channels == out_channels, stride=1)
    c = 8
    x2 = jax.random.normal(kx2, (N, c, L), jnp.float32)
    p2 = init_params(kp2, c, c, has_shortcut=False)
    out2 = jax.block_until_ready(basic_block1d(x2, p2, has_shortcut=False))
    ref2 = reference_block(x2, p2, has_shortcut=False)
    assert out2.shape == (N, c, L)
    assert jnp.allclose(out2, ref2, rtol=2e-3, atol=2e-3), "identity-branch mismatch"

    print("KERNEL_OK")
</pallas_src>

<mosaic_0001>
module attributes {stable_mosaic.version = 11 : i64} {
  func.func @_conv1_sc_kernel(%arg0: i32, %arg1: memref<1x16x4xf32, #tpu.memory_space<vmem>>, %arg2: memref<3x4x128xf32, #tpu.memory_space<vmem>>, %arg3: memref<4x128xf32, #tpu.memory_space<vmem>>, %arg4: memref<1x16x128xf32, #tpu.memory_space<vmem>>, %arg5: memref<1x16x128xf32, #tpu.memory_space<vmem>>, %arg6: memref<1x2x128xf32, #tpu.memory_space<vmem>>, %arg7: memref<1x2x128xf32, #tpu.memory_space<vmem>>, %arg8: memref<18x4xf32, #tpu.memory_space<vmem>>) attributes {dimension_semantics = [#tpu.dimension_semantics<parallel>], iteration_bounds = array<i64: 2>, scalar_prefetch = 0 : i64, scratch_operands = 1 : i64, tpu.core_type = #tpu.core_type<tc>, window_params = [{transform_indices = @transform_0, window_bounds = array<i64: 1, 16, 4>}, {pipeline_mode = #tpu.pipeline_mode<synchronous>, transform_indices = @transform_1, window_bounds = array<i64: 3, 4, 128>}, {pipeline_mode = #tpu.pipeline_mode<synchronous>, transform_indices = @transform_2, window_bounds = array<i64: 4, 128>}, {transform_indices = @transform_3, window_bounds = array<i64: 1, 16, 128>}, {transform_indices = @transform_4, window_bounds = array<i64: 1, 16, 128>}, {transform_indices = @transform_5, window_bounds = array<i64: 1, 2, 128>}, {transform_indices = @transform_6, window_bounds = array<i64: 1, 2, 128>}]} {
    %c0 = arith.constant 0 : index
    %c0_0 = arith.constant 0 : index
    %c0_1 = arith.constant 0 : index
    %0 = vector.load %arg1[%c0, %c0_0, %c0_1] : memref<1x16x4xf32, #tpu.memory_space<vmem>>, vector<1x16x4xf32>
    %1 = vector.shape_cast %0 : vector<1x16x4xf32> to vector<16x4xf32>
    %cst = arith.constant 0.000000e+00 : f32
    %2 = vector.broadcast %cst : f32 to vector<1x4xf32>
    %c0_2 = arith.constant 0 : index
    %c0_3 = arith.constant 0 : index
    %3 = vector.load %arg8[%c0_2, %c0_3] : memref<18x4xf32, #tpu.memory_space<vmem>>, vector<1x4xf32>
    tpu.vector_store %arg8[%c0_2, %c0_3], %2 {strides = array<i32>} : memref<18x4xf32, #tpu.memory_space<vmem>>, vector<1x4xf32>,
    %cst_4 = arith.constant 0.000000e+00 : f32
    %4 = vector.broadcast %cst_4 : f32 to vector<1x4xf32>
    %c17 = arith.constant 17 : index
    %c0_5 = arith.constant 0 : index
    %5 = vector.load %arg8[%c17, %c0_5] : memref<18x4xf32, #tpu.memory_space<vmem>>, vector<1x4xf32>
    tpu.vector_store %arg8[%c17, %c0_5], %4 {strides = array<i32>} : memref<18x4xf32, #tpu.memory_space<vmem>>, vector<1x4xf32>,
    %c1 = arith.constant 1 : index
    %c0_6 = arith.constant 0 : index
    %6 = vector.load %arg8[%c1, %c0_6] : memref<18x4xf32, #tpu.memory_space<vmem>>, vector<16x4xf32>
    tpu.vector_store %arg8[%c1, %c0_6], %1 {strides = array<i32>} : memref<18x4xf32, #tpu.memory_space<vmem>>, vector<16x4xf32>,
    %c0_7 = arith.constant 0 : index
    %c0_8 = arith.constant 0 : index
    %7 = vector.load %arg8[%c0_7, %c0_8] : memref<18x4xf32, #tpu.memory_space<vmem>>, vector<16x4xf32>
    %c0_9 = arith.constant 0 : index
    %c0_10 = arith.constant 0 : index
    %c0_11 = arith.constant 0 : index
    %8 = vector.load %arg2[%c0_9, %c0_10, %c0_11] : memref<3x4x128xf32, #tpu.memory_space<vmem>>, vector<1x4x128xf32>
    %9 = vector.shape_cast %8 : vector<1x4x128xf32> to vector<4x128xf32>
    %cst_12 = arith.constant dense<0.000000e+00> : vector<16x128xf32>
    %10 = tpu.matmul %7, %9, %cst_12 {dimension_numbers = #tpu.dot_dimension_numbers<[1], [0], [0], [1], [0, 0, 1, 1], [], []>} : vector<16x4xf32>, vector<4x128xf32>, vector<16x128xf32> -> vector<16x128xf32>
    %c1_13 = arith.constant 1 : index
    %c0_14 = arith.constant 0 : index
    %11 = vector.load %arg8[%c1_13, %c0_14] : memref<18x4xf32, #tpu.memory_space<vmem>>, vector<16x4xf32>
    %c1_15 = arith.constant 1 : index
    %c0_16 = arith.constant 0 : index
    %c0_17 = arith.constant 0 : index
    %12 = vector.load %arg2[%c1_15, %c0_16, %c0_17] : memref<3x4x128xf32, #tpu.memory_space<vmem>>, vector<1x4x128xf32>
    %13 = vector.shape_cast %12 : vector<1x4x128xf32> to vector<4x128xf32>
    %cst_18 = arith.constant dense<0.000000e+00> : vector<16x128xf32>
    %14 = tpu.matmul %11, %13, %cst_18 {dimension_numbers = #tpu.dot_dimension_numbers<[1], [0], [0], [1], [0, 0, 1, 1], [], []>} : vector<16x4xf32>, vector<4x128xf32>, vector<16x128xf32> -> vector<16x128xf32>
    %15 = arith.addf %10, %14 : vector<16x128xf32>
    %c2 = arith.constant 2 : index
    %c0_19 = arith.constant 0 : index
    %16 = vector.load %arg8[%c2, %c0_19] : memref<18x4xf32, #tpu.memory_space<vmem>>, vector<16x4xf32>
    %c2_20 = arith.constant 2 : index
    %c0_21 = arith.constant 0 : index
    %c0_22 = arith.constant 0 : index
    %17 = vector.load %arg2[%c2_20, %c0_21, %c0_22] : memref<3x4x128xf32, #tpu.memory_space<vmem>>, vector<1x4x128xf32>
    %18 = vector.shape_cast %17 : vector<1x4x128xf32> to vector<4x128xf32>
    %cst_23 = arith.constant dense<0.000000e+00> : vector<16x128xf32>
    %19 = tpu.matmul %16, %18, %cst_23 {dimension_numbers = #tpu.dot_dimension_numbers<[1], [0], [0], [1], [0, 0, 1, 1], [], []>} : vector<16x4xf32>, vector<4x128xf32>, vector<16x128xf32> -> vector<16x128xf32>
    %20 = arith.addf %15, %19 : vector<16x128xf32>
    %c0_24 = arith.constant 0 : index
    %c0_25 = arith.constant 0 : index
    %c0_26 = arith.constant 0 : index
    %21 = vector.load %arg4[%c0_24, %c0_25, %c0_26] : memref<1x16x128xf32, #tpu.memory_space<vmem>>, vector<1x16x128xf32>
    %22 = vector.shape_cast %21 : vector<1x16x128xf32> to vector<16x128xf32>
    %23 = vector.shape_cast %20 : vector<16x128xf32> to vector<1x16x128xf32>
    tpu.vector_store %arg4[%c0_24, %c0_25, %c0_26], %23 {strides = array<i32>} : memref<1x16x128xf32, #tpu.memory_space<vmem>>, vector<1x16x128xf32>,
    %cst_27 = arith.constant dense<0.000000e+00> : vector<128xf32>
    %24 = vector.multi_reduction <add>, %20, %cst_27 [0] : vector<16x128xf32> to vector<128xf32>
    %25 = vector.shape_cast %24 : vector<128xf32> to vector<1x128xf32>
    %26 = arith.mulf %20, %20 : vector<16x128xf32>
    %cst_28 = arith.constant dense<0.000000e+00> : vector<128xf32>
    %27 = vector.multi_reduction <add>, %26, %cst_28 [0] : vector<16x128xf32> to vector<128xf32>
    %28 = vector.shape_cast %27 : vector<128xf32> to vector<1x128xf32>
    %29 = tpu.concatenate %25, %28 in 0 : vector<1x128xf32>, vector<1x128xf32> -> vector<2x128xf32>
    %c0_29 = arith.constant 0 : index
    %c0_30 = arith.constant 0 : index
    %c0_31 = arith.constant 0 : index
    %30 = vector.load %arg6[%c0_29, %c0_30, %c0_31] : memref<1x2x128xf32, #tpu.memory_space<vmem>>, vector<1x2x128xf32>
    %31 = vector.shape_cast %30 : vector<1x2x128xf32> to vector<2x128xf32>
    %32 = vector.shape_cast %29 : vector<2x128xf32> to vector<1x2x128xf32>
    tpu.vector_store %arg6[%c0_29, %c0_30, %c0_31], %32 {strides = array<i32>} : memref<1x2x128xf32, #tpu.memory_space<vmem>>, vector<1x2x128xf32>,
    %c0_32 = arith.constant 0 : index
    %c0_33 = arith.constant 0 : index
    %33 = vector.load %arg3[%c0_32, %c0_33] : memref<4x128xf32, #tpu.memory_space<vmem>>, vector<4x128xf32>
    %cst_34 = arith.constant dense<0.000000e+00> : vector<16x128xf32>
    %34 = tpu.matmul %1, %33, %cst_34 {dimension_numbers = #tpu.dot_dimension_numbers<[1], [0], [0], [1], [0, 0, 1, 1], [], []>} : vector<16x4xf32>, vector<4x128xf32>, vector<16x128xf32> -> vector<16x128xf32>
    %c0_35 = arith.constant 0 : index
    %c0_36 = arith.constant 0 : index
    %c0_37 = arith.constant 0 : index
    %35 = vector.load %arg5[%c0_35, %c0_36, %c0_37] : memref<1x16x128xf32, #tpu.memory_space<vmem>>, vector<1x16x128xf32>
    %36 = vector.shape_cast %35 : vector<1x16x128xf32> to vector<16x128xf32>
    %37 = vector.shape_cast %34 : vector<16x128xf32> to vector<1x16x128xf32>
    tpu.vector_store %arg5[%c0_35, %c0_36, %c0_37], %37 {strides = array<i32>} : memref<1x16x128xf32, #tpu.memory_space<vmem>>, vector<1x16x128xf32>,
    %cst_38 = arith.constant dense<0.000000e+00> : vector<128xf32>
    %38 = vector.multi_reduction <add>, %34, %cst_38 [0] : vector<16x128xf32> to vector<128xf32>
    %39 = vector.shape_cast %38 : vector<128xf32> to vector<1x128xf32>
    %40 = arith.mulf %34, %34 : vector<16x128xf32>
    %cst_39 = arith.constant dense<0.000000e+00> : vector<128xf32>
    %41 = vector.multi_reduction <add>, %40, %cst_39 [0] : vector<16x128xf32> to vector<128xf32>
    %42 = vector.shape_cast %41 : vector<128xf32> to vector<1x128xf32>
    %43 = tpu.concatenate %39, %42 in 0 : vector<1x128xf32>, vector<1x128xf32> -> vector<2x128xf32>
    %c0_40 = arith.constant 0 : index
    %c0_41 = arith.constant 0 : index
    %c0_42 = arith.constant 0 : index
    %44 = vector.load %arg7[%c0_40, %c0_41, %c0_42] : memref<1x2x128xf32, #tpu.memory_space<vmem>>, vector<1x2x128xf32>
    %45 = vector.shape_cast %44 : vector<1x2x128xf32> to vector<2x128xf32>
    %46 = vector.shape_cast %43 : vector<2x128xf32> to vector<1x2x128xf32>
    tpu.vector_store %arg7[%c0_40, %c0_41, %c0_42], %46 {strides = array<i32>} : memref<1x2x128xf32, #tpu.memory_space<vmem>>, vector<1x2x128xf32>,
    return
  }
  func.func @transform_0(%arg0: i32) -> (i32, i32, i32) {
    %c0_i32 = arith.constant 0 : i32
    %c0_i32_0 = arith.constant 0 : i32
    %c0_i32_1 = arith.constant 0 : i32
    return %arg0, %c0_i32, %c0_i32_0 : i32, i32, i32
  }
  func.func @transform_1(%arg0: i32) -> (i32, i32, i32) {
    %c0_i32 = arith.constant 0 : i32
    %c0_i32_0 = arith.constant 0 : i32
    %c0_i32_1 = arith.constant 0 : i32
    %c0_i32_2 = arith.constant 0 : i32
    return %c0_i32, %c0_i32_0, %c0_i32_1 : i32, i32, i32
  }
  func.func @transform_2(%arg0: i32) -> (i32, i32) {
    %c0_i32 = arith.constant 0 : i32
    %c0_i32_0 = arith.constant 0 : i32
    %c0_i32_1 = arith.constant 0 : i32
    return %c0_i32, %c0_i32_0 : i32, i32
  }
  func.func @transform_3(%arg0: i32) -> (i32, i32, i32) {
    %c0_i32 = arith.constant 0 : i32
    %c0_i32_0 = arith.constant 0 : i32
    %c0_i32_1 = arith.constant 0 : i32
    return %arg0, %c0_i32, %c0_i32_0 : i32, i32, i32
  }
  func.func @transform_4(%arg0: i32) -> (i32, i32, i32) {
    %c0_i32 = arith.constant 0 : i32
    %c0_i32_0 = arith.constant 0 : i32
    %c0_i32_1 = arith.constant 0 : i32
    return %arg0, %c0_i32, %c0_i32_0 : i32, i32, i32
  }
  func.func @transform_5(%arg0: i32) -> (i32, i32, i32) {
    %c0_i32 = arith.constant 0 : i32
    %c0_i32_0 = arith.constant 0 : i32
    %c0_i32_1 = arith.constant 0 : i32
    return %arg0, %c0_i32, %c0_i32_0 : i32, i32, i32
  }
  func.func @transform_6(%arg0: i32) -> (i32, i32, i32) {
    %c0_i32 = arith.constant 0 : i32
    %c0_i32_0 = arith.constant 0 : i32
    %c0_i32_1 = arith.constant 0 : i32
    return %arg0, %c0_i32, %c0_i32_0 : i32, i32, i32
  }
}

module attributes {stable_mosaic.version = 11 : i64} {
  func.func @_final_sc_kernel(%arg0: i32, %arg1: memref<1x16x128xf32, #tpu.memory_space<vmem>>, %arg2: memref<1x16x128xf32, #tpu.memory_space<vmem>>, %arg3: memref<1x128xf32, #tpu.memory_space<vmem>>, %arg4: memref<1x128xf32, #tpu.memory_space<vmem>>, %arg5: memref<1x128xf32, #tpu.memory_space<vmem>>, %arg6: memref<1x128xf32, #tpu.memory_space<vmem>>, %arg7: memref<1x16x128xf32, #tpu.memory_space<vmem>>) attributes {dimension_semantics = [#tpu.dimension_semantics<parallel>], iteration_bounds = array<i64: 2>, scalar_prefetch = 0 : i64, scratch_operands = 0 : i64, tpu.core_type = #tpu.core_type<tc>, window_params = [{transform_indices = @transform_0, window_bounds = array<i64: 1, 16, 128>}, {transform_indices = @transform_1, window_bounds = array<i64: 1, 16, 128>}, {pipeline_mode = #tpu.pipeline_mode<synchronous>, transform_indices = @transform_2, window_bounds = array<i64: 1, 128>}, {pipeline_mode = #tpu.pipeline_mode<synchronous>, transform_indices = @transform_3, window_bounds = array<i64: 1, 128>}, {pipeline_mode = #tpu.pipeline_mode<synchronous>, transform_indices = @transform_4, window_bounds = array<i64: 1, 128>}, {pipeline_mode = #tpu.pipeline_mode<synchronous>, transform_indices = @transform_5, window_bounds = array<i64: 1, 128>}, {transform_indices = @transform_6, window_bounds = array<i64: 1, 16, 128>}]} {
    %c0 = arith.constant 0 : index
    %c0_0 = arith.constant 0 : index
    %c0_1 = arith.constant 0 : index
    %0 = vector.load %arg1[%c0, %c0_0, %c0_1] : memref<1x16x128xf32, #tpu.memory_space<vmem>>, vector<1x16x128xf32>
    %1 = vector.shape_cast %0 : vector<1x16x128xf32> to vector<16x128xf32>
    %c0_2 = arith.constant 0 : index
    %c0_3 = arith.constant 0 : index
    %2 = vector.load %arg3[%c0_2, %c0_3] : memref<1x128xf32, #tpu.memory_space<vmem>>, vector<1x128xf32>
    %3 = vector.broadcast %2 : vector<1x128xf32> to vector<16x128xf32>
    %4 = arith.mulf %1, %3 : vector<16x128xf32>
    %c0_4 = arith.constant 0 : index
    %c0_5 = arith.constant 0 : index
    %5 = vector.load %arg4[%c0_4, %c0_5] : memref<1x128xf32, #tpu.memory_space<vmem>>, vector<1x128xf32>
    %6 = vector.broadcast %5 : vector<1x128xf32> to vector<16x128xf32>
    %7 = arith.addf %4, %6 : vector<16x128xf32>
    %c0_6 = arith.constant 0 : index
    %c0_7 = arith.constant 0 : index
    %c0_8 = arith.constant 0 : index
    %8 = vector.load %arg2[%c0_6, %c0_7, %c0_8] : memref<1x16x128xf32, #tpu.memory_space<vmem>>, vector<1x16x128xf32>
    %9 = vector.shape_cast %8 : vector<1x16x128xf32> to vector<16x128xf32>
    %c0_9 = arith.constant 0 : index
    %c0_10 = arith.constant 0 : index
    %10 = vector.load %arg5[%c0_9, %c0_10] : memref<1x128xf32, #tpu.memory_space<vmem>>, vector<1x128xf32>
    %11 = vector.broadcast %10 : vector<1x128xf32> to vector<16x128xf32>
    %12 = arith.mulf %9, %11 : vector<16x128xf32>
    %c0_11 = arith.constant 0 : index
    %c0_12 = arith.constant 0 : index
    %13 = vector.load %arg6[%c0_11, %c0_12] : memref<1x128xf32, #tpu.memory_space<vmem>>, vector<1x128xf32>
    %14 = vector.broadcast %13 : vector<1x128xf32> to vector<16x128xf32>
    %15 = arith.addf %12, %14 : vector<16x128xf32>
    %16 = arith.addf %7, %15 : vector<16x128xf32>
    %cst = arith.constant 0.000000e+00 : f32
    %17 = vector.broadcast %cst : f32 to vector<16x128xf32>
    %18 = arith.maximumf %16, %17 : vector<16x128xf32>
    %c0_13 = arith.constant 0 : index
    %c0_14 = arith.constant 0 : index
    %c0_15 = arith.constant 0 : index
    %19 = vector.load %arg7[%c0_13, %c0_14, %c0_15] : memref<1x16x128xf32, #tpu.memory_space<vmem>>, vector<1x16x128xf32>
    %20 = vector.shape_cast %19 : vector<1x16x128xf32> to vector<16x128xf32>
    %21 = vector.shape_cast %18 : vector<16x128xf32> to vector<1x16x128xf32>
    tpu.vector_store %arg7[%c0_13, %c0_14, %c0_15], %21 {strides = array<i32>} : memref<1x16x128xf32, #tpu.memory_space<vmem>>, vector<1x16x128xf32>,
    return
  }
  func.func @transform_0(%arg0: i32) -> (i32, i32, i32) {
    %c0_i32 = arith.constant 0 : i32
    %c0_i32_0 = arith.constant 0 : i32
    %c0_i32_1 = arith.constant 0 : i32
    return %arg0, %c0_i32, %c0_i32_0 : i32, i32, i32
  }
  func.func @transform_1(%arg0: i32) -> (i32, i32, i32) {
    %c0_i32 = arith.constant 0 : i32
    %c0_i32_0 = arith.constant 0 : i32
    %c0_i32_1 = arith.constant 0 : i32
    return %arg0, %c0_i32, %c0_i32_0 : i32, i32, i32
  }
  func.func @transform_2(%arg0: i32) -> (i32, i32) {
    %c0_i32 = arith.constant 0 : i32
    %c0_i32_0 = arith.constant 0 : i32
    %c0_i32_1 = arith.constant 0 : i32
    return %c0_i32, %c0_i32_0 : i32, i32
  }
  func.func @transform_3(%arg0: i32) -> (i32, i32) {
    %c0_i32 = arith.constant 0 : i32
    %c0_i32_0 = arith.constant 0 : i32
    %c0_i32_1 = arith.constant 0 : i32
    return %c0_i32, %c0_i32_0 : i32, i32
  }
  func.func @transform_4(%arg0: i32) -> (i32, i32) {
    %c0_i32 = arith.constant 0 : i32
    %c0_i32_0 = arith.constant 0 : i32
    %c0_i32_1 = arith.constant 0 : i32
    return %c0_i32, %c0_i32_0 : i32, i32
  }
  func.func @transform_5(%arg0: i32) -> (i32, i32) {
    %c0_i32 = arith.constant 0 : i32
    %c0_i32_0 = arith.constant 0 : i32
    %c0_i32_1 = arith.constant 0 : i32
    return %c0_i32, %c0_i32_0 : i32, i32
  }
  func.func @transform_6(%arg0: i32) -> (i32, i32, i32) {
    %c0_i32 = arith.constant 0 : i32
    %c0_i32_0 = arith.constant 0 : i32
    %c0_i32_1 = arith.constant 0 : i32
    return %arg0, %c0_i32, %c0_i32_0 : i32, i32, i32
  }
}

module attributes {stable_mosaic.version = 11 : i64} {
  func.func @_conv2_kernel(%arg0: i32, %arg1: memref<1x16x128xf32, #tpu.memory_space<vmem>>, %arg2: memref<1x128xf32, #tpu.memory_space<vmem>>, %arg3: memref<1x128xf32, #tpu.memory_space<vmem>>, %arg4: memref<3x128x128xf32, #tpu.memory_space<vmem>>, %arg5: memref<1x16x128xf32, #tpu.memory_space<vmem>>, %arg6: memref<1x2x128xf32, #tpu.memory_space<vmem>>, %arg7: memref<18x128xf32, #tpu.memory_space<vmem>>) attributes {dimension_semantics = [#tpu.dimension_semantics<parallel>], iteration_bounds = array<i64: 2>, scalar_prefetch = 0 : i64, scratch_operands = 1 : i64, tpu.core_type = #tpu.core_type<tc>, window_params = [{transform_indices = @transform_0, window_bounds = array<i64: 1, 16, 128>}, {pipeline_mode = #tpu.pipeline_mode<synchronous>, transform_indices = @transform_1, window_bounds = array<i64: 1, 128>}, {pipeline_mode = #tpu.pipeline_mode<synchronous>, transform_indices = @transform_2, window_bounds = array<i64: 1, 128>}, {pipeline_mode = #tpu.pipeline_mode<synchronous>, transform_indices = @transform_3, window_bounds = array<i64: 3, 128, 128>}, {transform_indices = @transform_4, window_bounds = array<i64: 1, 16, 128>}, {transform_indices = @transform_5, window_bounds = array<i64: 1, 2, 128>}]} {
    %c0 = arith.constant 0 : index
    %c0_0 = arith.constant 0 : index
    %c0_1 = arith.constant 0 : index
    %0 = vector.load %arg1[%c0, %c0_0, %c0_1] : memref<1x16x128xf32, #tpu.memory_space<vmem>>, vector<1x16x128xf32>
    %1 = vector.shape_cast %0 : vector<1x16x128xf32> to vector<16x128xf32>
    %c0_2 = arith.constant 0 : index
    %c0_3 = arith.constant 0 : index
    %2 = vector.load %arg2[%c0_2, %c0_3] : memref<1x128xf32, #tpu.memory_space<vmem>>, vector<1x128xf32>
    %3 = vector.broadcast %2 : vector<1x128xf32> to vector<16x128xf32>
    %4 = arith.mulf %1, %3 : vector<16x128xf32>
    %c0_4 = arith.constant 0 : index
    %c0_5 = arith.constant 0 : index
    %5 = vector.load %arg3[%c0_4, %c0_5] : memref<1x128xf32, #tpu.memory_space<vmem>>, vector<1x128xf32>
    %6 = vector.broadcast %5 : vector<1x128xf32> to vector<16x128xf32>
    %7 = arith.addf %4, %6 : vector<16x128xf32>
    %cst = arith.constant 0.000000e+00 : f32
    %8 = vector.broadcast %cst : f32 to vector<16x128xf32>
    %9 = arith.maximumf %7, %8 : vector<16x128xf32>
    %cst_6 = arith.constant 0.000000e+00 : f32
    %10 = vector.broadcast %cst_6 : f32 to vector<1x128xf32>
    %c0_7 = arith.constant 0 : index
    %c0_8 = arith.constant 0 : index
    %11 = vector.load %arg7[%c0_7, %c0_8] : memref<18x128xf32, #tpu.memory_space<vmem>>, vector<1x128xf32>
    tpu.vector_store %arg7[%c0_7, %c0_8], %10 {strides = array<i32>} : memref<18x128xf32, #tpu.memory_space<vmem>>, vector<1x128xf32>,
    %cst_9 = arith.constant 0.000000e+00 : f32
    %12 = vector.broadcast %cst_9 : f32 to vector<1x128xf32>
    %c17 = arith.constant 17 : index
    %c0_10 = arith.constant 0 : index
    %13 = vector.load %arg7[%c17, %c0_10] : memref<18x128xf32, #tpu.memory_space<vmem>>, vector<1x128xf32>
    tpu.vector_store %arg7[%c17, %c0_10], %12 {strides = array<i32>} : memref<18x128xf32, #tpu.memory_space<vmem>>, vector<1x128xf32>,
    %c1 = arith.constant 1 : index
    %c0_11 = arith.constant 0 : index
    %14 = vector.load %arg7[%c1, %c0_11] : memref<18x128xf32, #tpu.memory_space<vmem>>, vector<16x128xf32>
    tpu.vector_store %arg7[%c1, %c0_11], %9 {strides = array<i32>} : memref<18x128xf32, #tpu.memory_space<vmem>>, vector<16x128xf32>,
    %c0_12 = arith.constant 0 : index
    %c0_13 = arith.constant 0 : index
    %15 = vector.load %arg7[%c0_12, %c0_13] : memref<18x128xf32, #tpu.memory_space<vmem>>, vector<16x128xf32>
    %c0_14 = arith.constant 0 : index
    %c0_15 = arith.constant 0 : index
    %c0_16 = arith.constant 0 : index
    %16 = vector.load %arg4[%c0_14, %c0_15, %c0_16] : memref<3x128x128xf32, #tpu.memory_space<vmem>>, vector<1x128x128xf32>
    %17 = vector.shape_cast %16 : vector<1x128x128xf32> to vector<128x128xf32>
    %cst_17 = arith.constant dense<0.000000e+00> : vector<16x128xf32>
    %18 = tpu.matmul %15, %17, %cst_17 {dimension_numbers = #tpu.dot_dimension_numbers<[1], [0], [0], [1], [0, 0, 1, 1], [], []>} : vector<16x128xf32>, vector<128x128xf32>, vector<16x128xf32> -> vector<16x128xf32>
    %c1_18 = arith.constant 1 : index
    %c0_19 = arith.constant 0 : index
    %19 = vector.load %arg7[%c1_18, %c0_19] : memref<18x128xf32, #tpu.memory_space<vmem>>, vector<16x128xf32>
    %c1_20 = arith.constant 1 : index
    %c0_21 = arith.constant 0 : index
    %c0_22 = arith.constant 0 : index
    %20 = vector.load %arg4[%c1_20, %c0_21, %c0_22] : memref<3x128x128xf32, #tpu.memory_space<vmem>>, vector<1x128x128xf32>
    %21 = vector.shape_cast %20 : vector<1x128x128xf32> to vector<128x128xf32>
    %cst_23 = arith.constant dense<0.000000e+00> : vector<16x128xf32>
    %22 = tpu.matmul %19, %21, %cst_23 {dimension_numbers = #tpu.dot_dimension_numbers<[1], [0], [0], [1], [0, 0, 1, 1], [], []>} : vector<16x128xf32>, vector<128x128xf32>, vector<16x128xf32> -> vector<16x128xf32>
    %23 = arith.addf %18, %22 : vector<16x128xf32>
    %c2 = arith.constant 2 : index
    %c0_24 = arith.constant 0 : index
    %24 = vector.load %arg7[%c2, %c0_24] : memref<18x128xf32, #tpu.memory_space<vmem>>, vector<16x128xf32>
    %c2_25 = arith.constant 2 : index
    %c0_26 = arith.constant 0 : index
    %c0_27 = arith.constant 0 : index
    %25 = vector.load %arg4[%c2_25, %c0_26, %c0_27] : memref<3x128x128xf32, #tpu.memory_space<vmem>>, vector<1x128x128xf32>
    %26 = vector.shape_cast %25 : vector<1x128x128xf32> to vector<128x128xf32>
    %cst_28 = arith.constant dense<0.000000e+00> : vector<16x128xf32>
    %27 = tpu.matmul %24, %26, %cst_28 {dimension_numbers = #tpu.dot_dimension_numbers<[1], [0], [0], [1], [0, 0, 1, 1], [], []>} : vector<16x128xf32>, vector<128x128xf32>, vector<16x128xf32> -> vector<16x128xf32>
    %28 = arith.addf %23, %27 : vector<16x128xf32>
    %c0_29 = arith.constant 0 : index
    %c0_30 = arith.constant 0 : index
    %c0_31 = arith.constant 0 : index
    %29 = vector.load %arg5[%c0_29, %c0_30, %c0_31] : memref<1x16x128xf32, #tpu.memory_space<vmem>>, vector<1x16x128xf32>
    %30 = vector.shape_cast %29 : vector<1x16x128xf32> to vector<16x128xf32>
    %31 = vector.shape_cast %28 : vector<16x128xf32> to vector<1x16x128xf32>
    tpu.vector_store %arg5[%c0_29, %c0_30, %c0_31], %31 {strides = array<i32>} : memref<1x16x128xf32, #tpu.memory_space<vmem>>, vector<1x16x128xf32>,
    %cst_32 = arith.constant dense<0.000000e+00> : vector<128xf32>
    %32 = vector.multi_reduction <add>, %28, %cst_32 [0] : vector<16x128xf32> to vector<128xf32>
    %33 = vector.shape_cast %32 : vector<128xf32> to vector<1x128xf32>
    %34 = arith.mulf %28, %28 : vector<16x128xf32>
    %cst_33 = arith.constant dense<0.000000e+00> : vector<128xf32>
    %35 = vector.multi_reduction <add>, %34, %cst_33 [0] : vector<16x128xf32> to vector<128xf32>
    %36 = vector.shape_cast %35 : vector<128xf32> to vector<1x128xf32>
    %37 = tpu.concatenate %33, %36 in 0 : vector<1x128xf32>, vector<1x128xf32> -> vector<2x128xf32>
    %c0_34 = arith.constant 0 : index
    %c0_35 = arith.constant 0 : index
    %c0_36 = arith.constant 0 : index
    %38 = vector.load %arg6[%c0_34, %c0_35, %c0_36] : memref<1x2x128xf32, #tpu.memory_space<vmem>>, vector<1x2x128xf32>
    %39 = vector.shape_cast %38 : vector<1x2x128xf32> to vector<2x128xf32>
    %40 = vector.shape_cast %37 : vector<2x128xf32> to vector<1x2x128xf32>
    tpu.vector_store %arg6[%c0_34, %c0_35, %c0_36], %40 {strides = array<i32>} : memref<1x2x128xf32, #tpu.memory_space<vmem>>, vector<1x2x128xf32>,
    return
  }
  func.func @transform_0(%arg0: i32) -> (i32, i32, i32) {
    %c0_i32 = arith.constant 0 : i32
    %c0_i32_0 = arith.constant 0 : i32
    %c0_i32_1 = arith.constant 0 : i32
    return %arg0, %c0_i32, %c0_i32_0 : i32, i32, i32
  }
  func.func @transform_1(%arg0: i32) -> (i32, i32) {
    %c0_i32 = arith.constant 0 : i32
    %c0_i32_0 = arith.constant 0 : i32
    %c0_i32_1 = arith.constant 0 : i32
    return %c0_i32, %c0_i32_0 : i32, i32
  }
  func.func @transform_2(%arg0: i32) -> (i32, i32) {
    %c0_i32 = arith.constant 0 : i32
    %c0_i32_0 = arith.constant 0 : i32
    %c0_i32_1 = arith.constant 0 : i32
    return %c0_i32, %c0_i32_0 : i32, i32
  }
  func.func @transform_3(%arg0: i32) -> (i32, i32, i32) {
    %c0_i32 = arith.constant 0 : i32
    %c0_i32_0 = arith.constant 0 : i32
    %c0_i32_1 = arith.constant 0 : i32
    %c0_i32_2 = arith.constant 0 : i32
    return %c0_i32, %c0_i32_0, %c0_i32_1 : i32, i32, i32
  }
  func.func @transform_4(%arg0: i32) -> (i32, i32, i32) {
    %c0_i32 = arith.constant 0 : i32
    %c0_i32_0 = arith.constant 0 : i32
    %c0_i32_1 = arith.constant 0 : i32
    return %arg0, %c0_i32, %c0_i32_0 : i32, i32, i32
  }
  func.func @transform_5(%arg0: i32) -> (i32, i32, i32) {
    %c0_i32 = arith.constant 0 : i32
    %c0_i32_0 = arith.constant 0 : i32
    %c0_i32_1 = arith.constant 0 : i32
    return %arg0, %c0_i32, %c0_i32_0 : i32, i32, i32
  }
}

</mosaic_0001>

<bundles_post_ra>
// kernel: basic_block1d.5
= control target key start
LH: loop header
LB: loop body
LE: loop exit
PB: predicated region body
PF: predicated region fallthrough
CT: control target
= control target key end

     0   :  { %s444_s21 = smov 0   ;;  %s476_s0 = inlined_call_operand.vmem [shape: f32[2,16,128], index: 0, kind: input, shape index: {}]   ;;  %s477_s1 = inlined_call_operand.vmem [shape: f32[2,16,128], index: 1, kind: input, shape index: {}]   ;;  %s478_s2 = inlined_call_operand.vmem [shape: f32[1,128], index: 2, kind: input, shape index: {}]   ;;  %s479_s3 = inlined_call_operand.vmem [shape: f32[1,128], index: 3, kind: input, shape index: {}]   ;;  %s480_s4 = inlined_call_operand.vmem [shape: f32[1,128], index: 4, kind: input, shape index: {}]   ;;  %s481_s5 = inlined_call_operand.vmem [shape: f32[1,128], index: 5, kind: input, shape index: {}]   ;;  %s482_s6 = inlined_call_operand.vmem [shape: f32[2,16,128], index: 6, kind: output, shape index: {}]  }
   0x1 LB: > { %s373_s22 = sadd.s32 4294967295, %s407_s21   ;;  %p377_p0 = scmp.ge.s32.totalorder %s407_s21, 1  ;;  %s407_s21 = sphi %s444_s21, %s16_s21  }
   0x2   : > { %p222_p1 = scmp.lt.s32.totalorder %s407_s21, 3 }
   0x4   : > { %p223_p2 = pnand %p377_p0, %p222_p1 }
   0x5   : > { %p257_p3 = scmp.lt.s32.totalorder (!%p223_p2), %s373_s22, 1 }
   0x6   : > { %226 = sbr.rel (%p223_p2) target bundleno = 26 (0x1a), region = 44 }
   0xb   : > { %s484_s22 = smov (!%p257_p3, %s373_s22), 1  ;;  %v397_v0 = vld [vmem:[%s478_s2] ss:$0 sm:$0xff] }
   0xc   : > { %v399_v1 = vld [vmem:[%s480_s4] ss:$0 sm:$0xff]  ;;  %s386_s27 = sshll.u32 %s484_s22, 4 }
   0xd   : > { %s261_s30 = scalar_lea.vmem %s476_s0, %s386_s27  ;;  %s266_s9 = scalar_lea.vmem %s477_s1, %s386_s27  ;;  %v398_v2 = vld [vmem:[%s479_s3] ss:$0 sm:$0xff] }
   0xe   : > { %v400_v3 = vld [vmem:[%s481_s5] ss:$0 sm:$0xff]  ;;  %v273_v5 = vld [vmem:[%s261_s30 + $0x8] sm:$0xff]  ;;  %s271_s16 = scalar_lea.vmem %s482_s6, %s386_s27 }
   0xf   : > { %v272_v4 = vld [vmem:[%s261_s30] sm:$0xff]  ;;  %v287_v8 = vld [vmem:[%s266_s9 + $0x8] sm:$0xff]  ;;  %v279_v10 = vmul.f32 %v397_v0, %v273_v5 }
  0x10   : > { %v286_v6 = vld [vmem:[%s266_s9] sm:$0xff]  ;;  %v278_v7 = vmul.f32 %v397_v0, %v272_v4  ;;  %v293_v11 = vmul.f32 %v399_v1, %v287_v8 }
  0x11   : > { %v292_v9 = vmul.f32 %v399_v1, %v286_v6  ;;  %v285_v14 = vadd.f32 %v398_v2, %v279_v10 }
  0x12   : > { %v284_v12 = vadd.f32 %v398_v2, %v278_v7  ;;  %v299_v15 = vadd.f32 %v400_v3, %v293_v11 }
  0x13   : > { %v298_v13 = vadd.f32 %v400_v3, %v292_v9 }
  0x14   : > { %v301_v17 = vadd.f32 %v299_v15, %v285_v14 }
  0x15   : > { %v300_v16 = vadd.f32 %v298_v13, %v284_v12 }
  0x16   : > { %v303_v19 = vmax.f32 %v301_v17, 0.0 }
  0x17   : > { %v302_v18 = vmax.f32 %v300_v16, 0.0 }
  0x18   : > { %305 = vst [vmem:[%s271_s16 + $0x8] sm:$0xff] %v303_v19 }
  0x19   : > { %304 = vst [vmem:[%s271_s16] sm:$0xff] %v302_v18 }
  0x1a PF: > { %s16_s21 = sadd.s32 1, %s407_s21  }
  0x1b   : > { %p13_p4 = scmp.ge.s32.totalorder %s16_s21, 4  }
  0x1d   :  { %15 = sbr.rel (!%p13_p4) target bundleno = 1 (0x1), region = 77 }

// kernel: basic_block1d.3
= control target key start
LH: loop header
LB: loop body
LE: loop exit
PB: predicated region body
PF: predicated region fallthrough
CT: control target
= control target key end

     0   :  { %s712_s21 = smov 0   ;;  %s771_s0 = inlined_call_operand.vmem [shape: f32[2,16,4], index: 0, kind: input, shape index: {}]   ;;  %s772_s1 = inlined_call_operand.vmem [shape: f32[3,4,128], index: 1, kind: input, shape index: {}]   ;;  %s773_s2 = inlined_call_operand.vmem [shape: f32[4,128], index: 2, kind: input, shape index: {}]   ;;  %s774_s3 = inlined_call_operand.vmem [shape: f32[2,16,128], index: 3, kind: output, shape index: {0}]   ;;  %s775_s4 = inlined_call_operand.vmem [shape: f32[2,16,128], index: 4, kind: output, shape index: {1}]   ;;  %s776_s5 = inlined_call_operand.vmem [shape: f32[2,2,128], index: 5, kind: output, shape index: {2}]   ;;  %s777_s6 = inlined_call_operand.vmem [shape: f32[2,2,128], index: 6, kind: output, shape index: {3}]  }
   0x1 LB: > { %s627_s22 = sadd.s32 4294967295, %s674_s21   ;;  %p631_p0 = scmp.ge.s32.totalorder %s674_s21, 1  ;;  %s674_s21 = sphi %s712_s21, %s17_s21  }
   0x2   : > { %p219_p1 = scmp.lt.s32.totalorder %s674_s21, 3 }
   0x4   : > { %p220_p2 = pnand %p631_p0, %p219_p1 }
   0x5   : > { %p262_p3 = scmp.lt.s32.totalorder (!%p220_p2), %s627_s22, 1 }
   0x6   : > { %223 = sbr.rel (%p220_p2) target bundleno = 186 (0xba), region = 32 }
   0xb   : > { %vm306_vm0 = vcmask 1043456   ;;  %v424_v0 = vld [vmem:[%s773_s2] sm:$0xf]  ;;  %vm287_vm1 = vcmask 24576   ;;  %v647_v1 = vld [vmem:[%s772_s1 + $0x8] sm:$0xf] }
   0xc   : > { %651 = vmatpush.msk.msra.mxu3 %vm306_vm0, %v424_v0  ;;  %v640_v2 = vld [vmem:[%s772_s1 + $0x4] sm:$0xf]  ;;  %v295_v3 = vld [vmem:[%s772_s1] sm:$0xf]  ;;  %s779_s22 = smov (!%p262_p3, %s627_s22), 1  ;;  %648 = vmatpush.msk.msra.mxu2 %vm306_vm0, %v647_v1  ;;  %v676_v4 = vmov 0.0  }
   0xd   : > { %641 = vmatpush.msk.msra.mxu0 %vm306_vm0, %v640_v2  ;;  %644 = vmatpush.msk.msra.mxu1 %vm306_vm0, %v295_v3  ;;  %288 = vst.msk [vmem:[#allocation2] sm:$0x1] %vm287_vm1, %v676_v4  ;;  %s735_s7 = sshll.u32 %s779_s22, 4  ;;  %vm290_vm2 = vcmask 31744   ;;  %s638_s17 = sshll.u32 %s779_s22, 1  ;;  %vm421_vm3 = vcmask 1040384  }
   0xe   : > { %289 = vst.msk [vmem:[#allocation2 + $0x11] sm:$0x1] %vm287_vm1, %v676_v4  ;;  %s266_s10 = scalar_lea.vmem %s771_s0, %s735_s7  ;;  %s276_s13 = scalar_lea.vmem %s775_s4, %s735_s7 }
   0xf   : > { %v285_v5 = vld [vmem:[%s266_s10] sm:$0xff]  ;;  %v286_v6 = vld [vmem:[%s266_s10 + $0x8] sm:$0xff]  ;;  %s271_s16 = scalar_lea.vmem %s774_s3, %s735_s7  ;;  %s284_s20 = scalar_lea.vmem %s777_s6, %s638_s17 }
  0x10   : > { %291 = vst.msk [vmem:[#allocation2 + $0x1] sm:$0xff] %vm290_vm2, %v285_v5  ;;  %652 = vmatmul.msk.f32.vlgmr.msra.gmra.mxu3 %vm290_vm2, %v285_v5  ;;  %s280_s24 = scalar_lea.vmem %s776_s5, %s638_s17 }
  0x11   : > { %292 = vst.msk [vmem:[#allocation2 + $0x9] sm:$0xff] %vm290_vm2, %v286_v6 }
  0x17   : > { %v296_v7 = vld [vmem:[#allocation2 + $0x1] sm:$0xff] }
  0x18   : > { %v293_v8 = vld [vmem:[#allocation2] sm:$0xff]  ;;  %653 = vmatmul.msk.f32.gmra.mxu3 %vm290_vm2, %v286_v6  ;;  %642 = vmatmul.msk.f32.vlgmr.msra.gmra.mxu0 %vm290_vm2, %v296_v7  ;;  %v297_v10 = vld [vmem:[#allocation2 + $0x9] sm:$0xff] }
  0x19   : > { %v365_v9 = vld [vmem:[#allocation2 + $0x2] sm:$0xff]  ;;  %645 = vmatmul.msk.f32.vlgmr.msra.gmra.mxu1 %vm290_vm2, %v293_v8  ;;  %v366_v11 = vld [vmem:[#allocation2 + $0xa] sm:$0xff] }
  0x1a   : > { %649 = vmatmul.msk.f32.vlgmr.msra.gmra.mxu2 %vm290_vm2, %v365_v9  ;;  %v294_v12 = vld [vmem:[#allocation2 + $0x8] sm:$0xff] }
  0x20   : > { %643 = vmatmul.msk.f32.gmra.mxu0 %vm290_vm2, %v297_v10 }
  0x21   : > { %646 = vmatmul.msk.f32.gmra.mxu1 %vm290_vm2, %v294_v12 }
  0x22   : > { %650 = vmatmul.msk.f32.gmra.mxu2 %vm290_vm2, %v366_v11 }
  0x93   : > { %v451_v13 = vpop.f32.mrf.mxu3 }
  0x94   : > { %457 = vst [vmem:[%s276_s13] sm:$0xff] %v451_v13  ;;  %v466_v17 = vmul.f32 %v451_v13, %v451_v13 }
  0x95   : > { %v327_v14 = vpop.f32.mrf.mxu0 }
  0x96   : > { %v359_v15 = vpop.f32.mrf.mxu1 }
  0x97   : > { %v360_v16 = vadd.f32 %v359_v15, %v327_v14 }
  0x9b   : > { %v454_v18 = vpop.f32.mrf.mxu3 }
  0x9c   : > { %458 = vst [vmem:[%s276_s13 + $0x8] sm:$0xff] %v454_v18  ;;  %v459_v20 = vadd.f32 %v454_v18, %v451_v13  ;;  %v467_v21 = vmul.f32 %v454_v18, %v454_v18 }
  0x9d   : > { %v395_v19 = vpop.f32.mrf.mxu2  ;;  %v330_v25 = vpop.f32.mrf.mxu0 }
  0x9e   : > { %v401_v22 = vadd.f32 %v395_v19, %v360_v16  ;;  %v460_v23 = vrot.slane %v459_v20, 4  ;;  %v468_v24 = vadd.f32 %v467_v21, %v466_v17  ;;  %v362_v26 = vpop.f32.mrf.mxu1 }
  0x9f   : > { %v363_v29 = vadd.f32 %v362_v26, %v330_v25 }
  0xa0   : > { %403 = vst [vmem:[%s271_s16] sm:$0xff] %v401_v22  ;;  %v461_v27 = vadd.f32 %v460_v23, %v459_v20  ;;  %v469_v28 = vrot.slane %v468_v24, 4  ;;  %v412_v38 = vmul.f32 %v401_v22, %v401_v22 }
  0xa2   : > { %v462_v30 = vrot.slane %v461_v27, 2  ;;  %v470_v31 = vadd.f32 %v469_v28, %v468_v24 }
  0xa4   : > { %v463_v32 = vadd.f32 %v462_v30, %v461_v27  ;;  %v471_v33 = vrot.slane %v470_v31, 2 }
  0xa5   : > { %v398_v34 = vpop.f32.mrf.mxu2 }
  0xa6   : > { %v402_v35 = vadd.f32 %v398_v34, %v363_v29  ;;  %v464_v36 = vrot.slane %v463_v32, 1  ;;  %v472_v37 = vadd.f32 %v471_v33, %v470_v31 }
  0xa8   : > { %404 = vst [vmem:[%s271_s16 + $0x8] sm:$0xff] %v402_v35  ;;  %v405_v39 = vadd.f32 %v402_v35, %v401_v22  ;;  %v413_v40 = vmul.f32 %v402_v35, %v402_v35  ;;  %v473_v41 = vrot.slane %v472_v37, 1  ;;  %v465_v44 = vadd.f32 %v464_v36, %v463_v32 }
  0xaa   : > { %v406_v42 = vrot.slane %v405_v39, 4  ;;  %v414_v43 = vadd.f32 %v413_v40, %v412_v38  ;;  %v474_v45 = vadd.f32 %v473_v41, %v472_v37 }
  0xac   : > { %v407_v46 = vadd.f32 %v406_v42, %v405_v39  ;;  %v415_v47 = vrot.slane %v414_v43, 4  ;;  %v475_v48 = vsel %vm421_vm3, %v465_v44, %v474_v45 }
  0xad   : > { %476 = vst [vmem:[%s284_s20] sm:$0x3] %v475_v48 }
  0xae   : > { %v408_v49 = vrot.slane %v407_v46, 2  ;;  %v416_v50 = vadd.f32 %v415_v47, %v414_v43 }
  0xb0   : > { %v409_v51 = vadd.f32 %v408_v49, %v407_v46  ;;  %v417_v52 = vrot.slane %v416_v50, 2 }
  0xb2   : > { %v410_v53 = vrot.slane %v409_v51, 1  ;;  %v418_v54 = vadd.f32 %v417_v52, %v416_v50 }
  0xb4   : > { %v419_v55 = vrot.slane %v418_v54, 1  ;;  %v411_v56 = vadd.f32 %v410_v53, %v409_v51 }
  0xb6   : > { %v420_v57 = vadd.f32 %v419_v55, %v418_v54 }
  0xb8   : > { %v422_v58 = vsel %vm421_vm3, %v411_v56, %v420_v57 }
  0xb9   : > { %423 = vst [vmem:[%s280_s24] sm:$0x3] %v422_v58 }
  0xba PF: > { %s17_s21 = sadd.s32 1, %s674_s21  }
  0xbb   : > { %p14_p4 = scmp.ge.s32.totalorder %s17_s21, 4  }
  0xbd   :  { %16 = sbr.rel (!%p14_p4) target bundleno = 1 (0x1), region = 100 }

// kernel: basic_block1d.4
= control target key start
LH: loop header
LB: loop body
LE: loop exit
PB: predicated region body
PF: predicated region fallthrough
CT: control target
= control target key end

     0   :  { %s602_s18 = smov 0   ;;  %s786_s0 = inlined_call_operand.vmem [shape: f32[2,16,128], index: 0, kind: input, shape index: {}]   ;;  %s787_s1 = inlined_call_operand.vmem [shape: f32[1,128], index: 1, kind: input, shape index: {}]   ;;  %s788_s2 = inlined_call_operand.vmem [shape: f32[1,128], index: 2, kind: input, shape index: {}]   ;;  %s789_s3 = inlined_call_operand.vmem [shape: f32[3,128,128], index: 3, kind: input, shape index: {}]   ;;  %s790_s4 = inlined_call_operand.vmem [shape: f32[2,16,128], index: 4, kind: output, shape index: {0}]   ;;  %s791_s5 = inlined_call_operand.vmem [shape: f32[2,2,128], index: 5, kind: output, shape index: {1}]  }
   0x1 LB: > { %s490_s19 = sadd.s32 4294967295, %s569_s18   ;;  %p494_p0 = scmp.ge.s32.totalorder %s569_s18, 1  ;;  %s569_s18 = sphi %s602_s18, %s16_s18  }
   0x2   : > { %p190_p1 = scmp.lt.s32.totalorder %s569_s18, 3 }
   0x4   : > { %p191_p2 = pnand %p494_p0, %p190_p1 }
   0x5   : > { %p619_p3 = scmp.lt.s32.totalorder (!%p191_p2), %s490_s19, 1 }
   0x6   : > { %194 = sbr.rel (%p191_p2) target bundleno = 203 (0xcb), region = 36 }
   0xb   : > { %v531_v0 = vld [vmem:[%s789_s3 + $0x178] sm:$0xff]  ;;  %v530_v1 = vld [vmem:[%s789_s3 + $0x170] sm:$0xff]  ;;  %v571_v5 = vmov 0.0   ;;  %v529_v6 = vld [vmem:[%s789_s3 + $0x168] sm:$0xff]  ;;  %s794_s19 = smov (!%p619_p3, %s490_s19), 1  ;;  %vm401_vm0 = vcmask 1040384  }
   0xc   : > { %v515_v2 = vld [vmem:[%s789_s3 + $0xf8] sm:$0xff]  ;;  %358 = vmatpush.msra.mxu2 %v531_v0  ;;  %v514_v4 = vld [vmem:[%s789_s3 + $0xf0] sm:$0xff]  ;;  %252 = vst [vmem:[#allocation2] sm:$0x1] %v571_v5  ;;  %v513_v8 = vld [vmem:[%s789_s3 + $0xe8] sm:$0xff]  ;;  %s534_s7 = sshll.u32 %s794_s19, 4 }
   0xd   : > { %293 = vmatpush.msra.mxu0 %v515_v2  ;;  %v273_v3 = vld [vmem:[%s789_s3 + $0x78] sm:$0xff]  ;;  %536 = vmatpush.msra.mxu3 %v515_v2  ;;  %v272_v7 = vld [vmem:[%s789_s3 + $0x70] sm:$0xff]  ;;  %253 = vst [vmem:[#allocation2 + $0x11] sm:$0x1] %v571_v5  ;;  %v271_v9 = vld [vmem:[%s789_s3 + $0x68] sm:$0xff]  ;;  %s226_s20 = scalar_lea.vmem %s786_s0, %s534_s7  ;;  %s231_s13 = scalar_lea.vmem %s790_s4, %s534_s7 }
   0xe   : > { %316 = vmatpush.msra.mxu1 %v273_v3  ;;  %359 = vmatpush.msra.mxu2 %v530_v1  ;;  %v528_v10 = vld [vmem:[%s789_s3 + $0x160] sm:$0xff]  ;;  %v527_v13 = vld [vmem:[%s789_s3 + $0x158] sm:$0xff]  ;;  %v526_v16 = vld [vmem:[%s789_s3 + $0x150] sm:$0xff]  ;;  %s499_s7 = sshll.u32 %s794_s19, 1 }
   0xf   : > { %294 = vmatpush.msra.mxu0 %v514_v4  ;;  %537 = vmatpush.msra.mxu3 %v514_v4  ;;  %v512_v11 = vld [vmem:[%s789_s3 + $0xe0] sm:$0xff]  ;;  %v511_v14 = vld [vmem:[%s789_s3 + $0xd8] sm:$0xff]  ;;  %v510_v17 = vld [vmem:[%s789_s3 + $0xd0] sm:$0xff]  ;;  %s235_s16 = scalar_lea.vmem %s791_s5, %s499_s7 }
  0x10   : > { %317 = vmatpush.msra.mxu1 %v272_v7  ;;  %360 = vmatpush.msra.mxu2 %v529_v6  ;;  %v270_v12 = vld [vmem:[%s789_s3 + $0x60] sm:$0xff]  ;;  %v269_v15 = vld [vmem:[%s789_s3 + $0x58] sm:$0xff]  ;;  %v268_v18 = vld [vmem:[%s789_s3 + $0x50] sm:$0xff] }
  0x11   : > { %295 = vmatpush.msra.mxu0 %v513_v8  ;;  %538 = vmatpush.msra.mxu3 %v513_v8  ;;  %v525_v19 = vld [vmem:[%s789_s3 + $0x148] sm:$0xff]  ;;  %v524_v22 = vld [vmem:[%s789_s3 + $0x140] sm:$0xff]  ;;  %v523_v24 = vld [vmem:[%s789_s3 + $0x138] sm:$0xff] }
  0x12   : > { %318 = vmatpush.msra.mxu1 %v271_v9  ;;  %361 = vmatpush.msra.mxu2 %v528_v10  ;;  %v509_v20 = vld [vmem:[%s789_s3 + $0xc8] sm:$0xff]  ;;  %v508_v23 = vld [vmem:[%s789_s3 + $0xc0] sm:$0xff]  ;;  %v522_v26 = vld [vmem:[%s789_s3 + $0x130] sm:$0xff] }
  0x13   : > { %296 = vmatpush.msra.mxu0 %v512_v11  ;;  %539 = vmatpush.msra.mxu3 %v512_v11  ;;  %v267_v21 = vld [vmem:[%s789_s3 + $0x48] sm:$0xff]  ;;  %v266_v25 = vld [vmem:[%s789_s3 + $0x40] sm:$0xff]  ;;  %v507_v27 = vld [vmem:[%s789_s3 + $0xb8] sm:$0xff] }
  0x14   : > { %319 = vmatpush.msra.mxu1 %v270_v12  ;;  %362 = vmatpush.msra.mxu2 %v527_v13  ;;  %v265_v28 = vld [vmem:[%s789_s3 + $0x38] sm:$0xff]  ;;  %v236_v29 = vld [vmem:[%s226_s20] sm:$0xff]  ;;  %v237_v30 = vld [vmem:[%s226_s20 + $0x8] sm:$0xff] }
  0x15   : > { %297 = vmatpush.msra.mxu0 %v511_v14  ;;  %540 = vmatpush.msra.mxu3 %v511_v14  ;;  %v561_v31 = vld [vmem:[%s787_s1] ss:$0 sm:$0xff]  ;;  %v506_v32 = vld [vmem:[%s789_s3 + $0xb0] sm:$0xff]  ;;  %v521_v37 = vld [vmem:[%s789_s3 + $0x128] sm:$0xff] }
  0x16   : > { %320 = vmatpush.msra.mxu1 %v269_v15  ;;  %363 = vmatpush.msra.mxu2 %v526_v16  ;;  %v562_v33 = vld [vmem:[%s788_s2] ss:$0 sm:$0xff]  ;;  %v264_v34 = vld [vmem:[%s789_s3 + $0x30] sm:$0xff]  ;;  %v242_v35 = vmul.f32 %v561_v31, %v236_v29  ;;  %v243_v36 = vmul.f32 %v561_v31, %v237_v30  ;;  %v505_v38 = vld [vmem:[%s789_s3 + $0xa8] sm:$0xff] }
  0x17   : > { %298 = vmatpush.msra.mxu0 %v510_v17  ;;  %541 = vmatpush.msra.mxu3 %v510_v17  ;;  %v263_v39 = vld [vmem:[%s789_s3 + $0x28] sm:$0xff]  ;;  %v520_v42 = vld [vmem:[%s789_s3 + $0x120] sm:$0xff]  ;;  %v519_v47 = vld [vmem:[%s789_s3 + $0x118] sm:$0xff] }
  0x18   : > { %321 = vmatpush.msra.mxu1 %v268_v18  ;;  %364 = vmatpush.msra.mxu2 %v525_v19  ;;  %v248_v40 = vadd.f32 %v562_v33, %v242_v35  ;;  %v249_v41 = vadd.f32 %v562_v33, %v243_v36  ;;  %v504_v43 = vld [vmem:[%s789_s3 + $0xa0] sm:$0xff]  ;;  %v503_v48 = vld [vmem:[%s789_s3 + $0x98] sm:$0xff]  ;;  %v518_v50 = vld [vmem:[%s789_s3 + $0x110] sm:$0xff] }
  0x19   : > { %299 = vmatpush.msra.mxu0 %v509_v20  ;;  %542 = vmatpush.msra.mxu3 %v509_v20  ;;  %v262_v44 = vld [vmem:[%s789_s3 + $0x20] sm:$0xff]  ;;  %v261_v49 = vld [vmem:[%s789_s3 + $0x18] sm:$0xff]  ;;  %v502_v51 = vld [vmem:[%s789_s3 + $0x90] sm:$0xff] }
  0x1a   : > { %322 = vmatpush.msra.mxu1 %v267_v21  ;;  %365 = vmatpush.msra.mxu2 %v524_v22  ;;  %v250_v45 = vmax.f32 %v248_v40, 0.0  ;;  %v251_v46 = vmax.f32 %v249_v41, 0.0  ;;  %v260_v52 = vld [vmem:[%s789_s3 + $0x10] sm:$0xff]  ;;  %v517_v53 = vld [vmem:[%s789_s3 + $0x108] sm:$0xff]  ;;  %v516_v56 = vld [vmem:[%s789_s3 + $0x100] sm:$0xff] }
  0x1b   : > { %300 = vmatpush.msra.mxu0 %v508_v23  ;;  %543 = vmatpush.msra.mxu3 %v508_v23  ;;  %v501_v54 = vld [vmem:[%s789_s3 + $0x88] sm:$0xff]  ;;  %v500_v57 = vld [vmem:[%s789_s3 + $0x80] sm:$0xff] }
  0x1c   : > { %323 = vmatpush.msra.mxu1 %v266_v25  ;;  %366 = vmatpush.msra.mxu2 %v523_v24  ;;  %254 = vst [vmem:[#allocation2 + $0x1] sm:$0xff] %v250_v45  ;;  %v259_v55 = vld [vmem:[%s789_s3 + $0x8] sm:$0xff]  ;;  %v258_v58 = vld [vmem:[%s789_s3] sm:$0xff] }
  0x1d   : > { %301 = vmatpush.msra.mxu0 %v507_v27  ;;  %544 = vmatpush.msra.mxu3 %v507_v27  ;;  %255 = vst [vmem:[#allocation2 + $0x9] sm:$0xff] %v251_v46 }
  0x1e   : > { %324 = vmatpush.msra.mxu1 %v265_v28  ;;  %367 = vmatpush.msra.mxu2 %v522_v26 }
  0x1f   : > { %302 = vmatpush.msra.mxu0 %v506_v32  ;;  %545 = vmatpush.msra.mxu3 %v506_v32 }
  0x20   : > { %325 = vmatpush.msra.mxu1 %v264_v34  ;;  %368 = vmatpush.msra.mxu2 %v521_v37 }
  0x21   : > { %303 = vmatpush.msra.mxu0 %v505_v38  ;;  %546 = vmatpush.msra.mxu3 %v505_v38 }
  0x22   : > { %326 = vmatpush.msra.mxu1 %v263_v39  ;;  %369 = vmatpush.msra.mxu2 %v520_v42 }
  0x23   : > { %304 = vmatpush.msra.mxu0 %v504_v43  ;;  %547 = vmatpush.msra.mxu3 %v504_v43  ;;  %v256_v59 = vld [vmem:[#allocation2] sm:$0xff] }
  0x24   : > { %327 = vmatpush.msra.mxu1 %v262_v44  ;;  %370 = vmatpush.msra.mxu2 %v519_v47  ;;  %v339_v60 = vld [vmem:[#allocation2 + $0x2] sm:$0xff]  ;;  %v340_v61 = vld [vmem:[#allocation2 + $0xa] sm:$0xff] }
  0x25   : > { %305 = vmatpush.msra.mxu0 %v503_v48  ;;  %548 = vmatpush.msra.mxu3 %v503_v48  ;;  %v257_v62 = vld [vmem:[#allocation2 + $0x8] sm:$0xff] }
  0x26   : > { %328 = vmatpush.msra.mxu1 %v261_v49  ;;  %371 = vmatpush.msra.mxu2 %v518_v50 }
  0x27   : > { %306 = vmatpush.msra.mxu0 %v502_v51  ;;  %549 = vmatpush.msra.mxu3 %v502_v51 }
  0x28   : > { %329 = vmatpush.msra.mxu1 %v260_v52  ;;  %372 = vmatpush.msra.mxu2 %v517_v53 }
  0x29   : > { %307 = vmatpush.msra.mxu0 %v501_v54  ;;  %550 = vmatpush.msra.mxu3 %v501_v54 }
  0x2a   : > { %330 = vmatpush.msra.mxu1 %v259_v55  ;;  %373 = vmatpush.msra.mxu2 %v516_v56 }
  0x2b   : > { %308 = vmatpush.msra.mxu0 %v500_v57  ;;  %374 = vmatmul.f32.vlgmr.msra.gmra.mxu2 %v339_v60 }
  0x2c   : > { %331 = vmatpush.msra.mxu1 %v258_v58  ;;  %309 = vmatmul.f32.vlgmr.msra.gmra.mxu0 %v250_v45 }
  0x2d   : > { %332 = vmatmul.f32.vlgmr.msra.gmra.mxu1 %v256_v59  ;;  %551 = vmatpush.msra.mxu3 %v500_v57 }
  0x2e   : > { %312 = vmatmul.f32.vlgmr.msra.gmra.mxu3 %v251_v46 }
  0x33   : > { %377 = vmatmul.f32.gmra.mxu2 %v340_v61 }
  0x35   : > { %335 = vmatmul.f32.gmra.mxu1 %v257_v62 }
  0xa9   : > { %v310_v63 = vpop.f32.mrf.mxu0 }
  0xaa   : > { %v333_v0 = vpop.f32.mrf.mxu1 }
  0xab   : > { %v334_v1 = vadd.f32 %v333_v0, %v310_v63 }
  0xae   : > { %v375_v2 = vpop.f32.mrf.mxu2 }
  0xaf   : > { %v381_v3 = vadd.f32 %v375_v2, %v334_v1 }
  0xb1   : > { %383 = vst [vmem:[%s231_s13] sm:$0xff] %v381_v3  ;;  %v313_v4 = vpop.f32.mrf.mxu3  ;;  %v392_v9 = vmul.f32 %v381_v3, %v381_v3 }
  0xb2   : > { %v336_v5 = vpop.f32.mrf.mxu1 }
  0xb3   : > { %v337_v6 = vadd.f32 %v336_v5, %v313_v4 }
  0xb6   : > { %v378_v7 = vpop.f32.mrf.mxu2 }
  0xb7   : > { %v382_v8 = vadd.f32 %v378_v7, %v337_v6 }
  0xb9   : > { %384 = vst [vmem:[%s231_s13 + $0x8] sm:$0xff] %v382_v8  ;;  %v385_v10 = vadd.f32 %v382_v8, %v381_v3  ;;  %v393_v11 = vmul.f32 %v382_v8, %v382_v8 }
  0xbb   : > { %v386_v12 = vrot.slane %v385_v10, 4  ;;  %v394_v13 = vadd.f32 %v393_v11, %v392_v9 }
  0xbd   : > { %v387_v14 = vadd.f32 %v386_v12, %v385_v10  ;;  %v395_v15 = vrot.slane %v394_v13, 4 }
  0xbf   : > { %v388_v16 = vrot.slane %v387_v14, 2  ;;  %v396_v17 = vadd.f32 %v395_v15, %v394_v13 }
  0xc1   : > { %v389_v18 = vadd.f32 %v388_v16, %v387_v14  ;;  %v397_v19 = vrot.slane %v396_v17, 2 }
  0xc3   : > { %v390_v20 = vrot.slane %v389_v18, 1  ;;  %v398_v21 = vadd.f32 %v397_v19, %v396_v17 }
  0xc5   : > { %v399_v22 = vrot.slane %v398_v21, 1  ;;  %v391_v23 = vadd.f32 %v390_v20, %v389_v18 }
  0xc7   : > { %v400_v24 = vadd.f32 %v399_v22, %v398_v21 }
  0xc9   : > { %v402_v25 = vsel %vm401_vm0, %v391_v23, %v400_v24 }
  0xca   : > { %403 = vst [vmem:[%s235_s16] sm:$0x3] %v402_v25 }
  0xcb PF: > { %s16_s18 = sadd.s32 1, %s569_s18  }
  0xcc   : > { %p13_p4 = scmp.ge.s32.totalorder %s16_s18, 4  }
  0xce   :  { %15 = sbr.rel (!%p13_p4) target bundleno = 1 (0x1), region = 80 }

</bundles_post_ra>
